<compile_context>
chip_gen: v7x
topology: tpu7x:2x2x1
jax: 0.10.0
libtpu: 0.0.40
codegen_flags: <defaults>
</compile_context>

<pallas_src>
import functools

import jax
import jax.numpy as jnp
from jax import lax
from jax.experimental import pallas as pl
from jax.experimental.pallas import tpu as pltpu

LANES = 128


def _loss_kernel(p_ref, l_ref, sse_ref, mape_ref, *,
                 rows, tile_rows, tiles_per_core, acc_rows):
    i = pl.program_id(0)          # core-split axis (CORE_PARALLEL on v7x)
    j = pl.program_id(1)          # streaming / reduction axis ("arbitrary")

    @pl.when(j == 0)
    def _init():
        sse_ref[...] = jnp.zeros_like(sse_ref)
        mape_ref[...] = jnp.zeros_like(mape_ref)

    t = i * tiles_per_core + j          # unclamped global tile id
    n_full = rows // tile_rows          # tiles whose rows are all in-bounds
    folds = tile_rows // acc_rows

    def accumulate(p, l):
        # RMSE numerator: sum((p - l)^2) with NaN -> 0 (matches the reference).
        diff = p - l
        sq = diff * diff
        sq = jnp.where(jnp.isnan(sq), jnp.zeros_like(sq), sq)
        # MaskedMAPE numerator.  Where |l| >= 1e-6 the reference's adjusted
        # label equals l, so |p - l_adj| == |diff|.  Exact division (no approx
        # reciprocal) keeps results within the 1e-5 tolerance; jnp.where is a
        # select, so garbage / Inf in masked lanes never leaks into the sum.
        # TODO(synk): a NaN in preds at a masked (|l| < 1e-6) position yields 0
        # here, whereas the PyTorch reference propagates NaN (NaN * 0).
        nz = jnp.abs(l) >= 1e-6
        l_safe = jnp.where(nz, jnp.abs(l), 1.0)
        mape = jnp.where(nz, jnp.abs(diff) / l_safe, 0.0)
        # Sublane-folded partial sums: pure VPU adds into up to four
        # independent (8,128) chains per accumulator.
        sse_ref[...] += sq.reshape(folds, acc_rows, LANES).sum(axis=0)
        mape_ref[...] += mape.reshape(folds, acc_rows, LANES).sum(axis=0)

    @pl.when(t < n_full)
    def _full_tile():
        # Hot path: no edge masking at all.
        accumulate(p_ref[...].astype(jnp.float32),
                   l_ref[...].astype(jnp.float32))

    @pl.when(t >= n_full)
    def _edge_tile():
        # Ragged last tile or clamped duplicate tile: zero out-of-range rows so
        # undefined / re-read data contributes nothing to either sum.
        row_ids = lax.broadcasted_iota(jnp.int32, (tile_rows, 1), 0)
        valid = (t * tile_rows + row_ids) < rows
        p = jnp.where(valid, p_ref[...].astype(jnp.float32), 0.0)
        l = jnp.where(valid, l_ref[...].astype(jnp.float32), 0.0)
        accumulate(p, l)


def dmvstnet_loss(preds, labels):
    assert preds.shape == labels.shape
    # Stream bf16 directly (halves HBM traffic); everything else goes via f32.
    if not (preds.dtype == jnp.bfloat16 and labels.dtype == jnp.bfloat16):
        preds = preds.astype(jnp.float32)
        labels = labels.astype(jnp.float32)
    n_elems = preds.size  # true element count for the means

    kind = ""
    try:
        kind = jax.devices()[0].device_kind.lower()
    except Exception:
        pass
    is_v5 = "v5" in kind
    is_v7 = "v7" in kind

    sub = 16 if preds.dtype == jnp.bfloat16 else 8   # min sublane granule
    max_tile_rows = 4096 if is_v5 else 8192          # v5e: 16 MiB scoped VMEM

    flat_p = preds.reshape(-1)   # reshape is free (no copy)
    flat_l = labels.reshape(-1)

    # Pad (an HBM copy, zeros are loss-neutral) only up to one sublane granule;
    # everything coarser is handled by the in-kernel edge branch.
    align = sub * LANES
    padded = max(-(-n_elems // align) * align, align)
    if padded != n_elems:
        flat_p = jnp.pad(flat_p, (0, padded - n_elems))
        flat_l = jnp.pad(flat_l, (0, padded - n_elems))
    rows = padded // LANES                      # multiple of `sub`

    tile_rows = min(max_tile_rows, rows)
    total_tiles = -(-rows // tile_rows)
    ncores = 2 if (is_v7 and total_tiles > 1) else 1
    tiles_per_core = -(-total_tiles // ncores)

    # Up to four independent (8,128) add chains per accumulator.
    acc_rows = 32 if tile_rows % 32 == 0 else (16 if tile_rows % 16 == 0 else 8)

    p2d = flat_p.reshape(rows, LANES)
    l2d = flat_l.reshape(rows, LANES)

    def in_index_map(i, j):
        # Clamp so the DMA block index stays in range; the kernel's edge branch
        # zeroes duplicated / out-of-range rows.
        return (jnp.minimum(i * tiles_per_core + j, total_tiles - 1), 0)

    kernel = functools.partial(
        _loss_kernel, rows=rows, tile_rows=tile_rows,
        tiles_per_core=tiles_per_core, acc_rows=acc_rows)

    dim0 = pltpu.CORE_PARALLEL if ncores > 1 else pltpu.ARBITRARY

    sse_part, mape_part = pl.pallas_call(
        kernel,
        out_shape=(
            jax.ShapeDtypeStruct((ncores * acc_rows, LANES), jnp.float32),
            jax.ShapeDtypeStruct((ncores * acc_rows, LANES), jnp.float32),
        ),
        grid_spec=pltpu.PrefetchScalarGridSpec(
            num_scalar_prefetch=0,
            grid=(ncores, tiles_per_core),
            in_specs=[
                pl.BlockSpec((tile_rows, LANES), in_index_map),
                pl.BlockSpec((tile_rows, LANES), in_index_map),
            ],
            out_specs=[
                pl.BlockSpec((acc_rows, LANES), lambda i, j: (i, 0)),
                pl.BlockSpec((acc_rows, LANES), lambda i, j: (i, 0)),
            ],
        ),
        compiler_params=pltpu.CompilerParams(
            dimension_semantics=(dim0, pltpu.ARBITRARY),
            vmem_limit_bytes=40 << 20,
        ),
    )(p2d, l2d)

    # Tiny epilogue (a few thousand elements): cross-lane reduce + sqrt + combine.
    inv_n = 1.0 / n_elems
    rmse = jnp.sqrt(jnp.sum(sse_part) * inv_n)
    mmape = jnp.sum(mape_part) * inv_n
    return rmse + 10.0 * mmape


def _reference_loss(preds, labels):
    mask = jnp.logical_not(jnp.abs(labels) < 1e-6).astype(jnp.float32)
    labels_adj = labels + (1.0 - mask)
    mape = jnp.mean(jnp.abs((preds - labels_adj) / labels_adj) * mask)
    sq = (preds - labels) ** 2
    sq = jnp.where(jnp.isnan(sq), jnp.zeros_like(sq), sq)
    rmse = jnp.sqrt(jnp.mean(sq))
    return rmse + 10.0 * mape


if __name__ == "__main__":
    key = jax.random.PRNGKey(0)
    kp, kl, km = jax.random.split(key, 3)
    B, C, H, W = 2, 4, 16, 16  # NCHW, matching the PyTorch convention
    preds = jax.random.normal(kp, (B, C, H, W), dtype=jnp.float32)
    labels = jax.random.normal(kl, (B, C, H, W), dtype=jnp.float32)
    # Sprinkle in exact zeros so the MAPE mask path is exercised.
    zero_mask = jax.random.bernoulli(km, 0.2, (B, C, H, W))
    labels = jnp.where(zero_mask, jnp.zeros_like(labels), labels)

    out = dmvstnet_loss(preds, labels)
    jax.block_until_ready(out)

    ref = _reference_loss(preds, labels)
    assert jnp.allclose(out, ref, rtol=1e-5, atol=1e-5), (out, ref)
    print("KERNEL_OK")
</pallas_src>

<mosaic_0001>
module attributes {stable_mosaic.version = 11 : i64} {
  func.func @_loss_kernel(%arg0: i32, %arg1: i32, %arg2: memref<16x128xf32, #tpu.memory_space<vmem>>, %arg3: memref<16x128xf32, #tpu.memory_space<vmem>>, %arg4: memref<16x128xf32, #tpu.memory_space<vmem>>, %arg5: memref<16x128xf32, #tpu.memory_space<vmem>>) attributes {dimension_semantics = [#tpu.dimension_semantics<arbitrary>, #tpu.dimension_semantics<arbitrary>], iteration_bounds = array<i64: 1, 1>, scalar_prefetch = 0 : i64, scratch_operands = 0 : i64, tpu.core_type = #tpu.core_type<tc>, window_params = [{transform_indices = @transform_0, window_bounds = array<i64: 16, 128>}, {transform_indices = @transform_1, window_bounds = array<i64: 16, 128>}, {transform_indices = @transform_2, window_bounds = array<i64: 16, 128>}, {transform_indices = @transform_3, window_bounds = array<i64: 16, 128>}]} {
    %c0_i32 = arith.constant 0 : i32
    %0 = arith.cmpi eq, %arg1, %c0_i32 : i32
    %1 = arith.extui %0 : i1 to i32
    %c0_i32_0 = arith.constant 0 : i32
    %2 = arith.cmpi ne, %1, %c0_i32_0 : i32
    scf.if %2 {
      %cst = arith.constant 0.000000e+00 : f32
      %11 = vector.broadcast %cst : f32 to vector<16x128xf32>
      %c0 = arith.constant 0 : index
      %c0_5 = arith.constant 0 : index
      %12 = vector.load %arg4[%c0, %c0_5] : memref<16x128xf32, #tpu.memory_space<vmem>>, vector<16x128xf32>
      tpu.vector_store %arg4[%c0, %c0_5], %11 {strides = array<i32>} : memref<16x128xf32, #tpu.memory_space<vmem>>, vector<16x128xf32>,
      %cst_6 = arith.constant 0.000000e+00 : f32
      %13 = vector.broadcast %cst_6 : f32 to vector<16x128xf32>
      %c0_7 = arith.constant 0 : index
      %c0_8 = arith.constant 0 : index
      %14 = vector.load %arg5[%c0_7, %c0_8] : memref<16x128xf32, #tpu.memory_space<vmem>>, vector<16x128xf32>
      tpu.vector_store %arg5[%c0_7, %c0_8], %13 {strides = array<i32>} : memref<16x128xf32, #tpu.memory_space<vmem>>, vector<16x128xf32>,
    } else {
    }
    %c1_i32 = arith.constant 1 : i32
    %3 = arith.muli %arg0, %c1_i32 : i32
    %4 = arith.addi %3, %arg1 : i32
    %c1_i32_1 = arith.constant 1 : i32
    %5 = arith.cmpi slt, %4, %c1_i32_1 : i32
    %6 = arith.extui %5 : i1 to i32
    %c0_i32_2 = arith.constant 0 : i32
    %7 = arith.cmpi ne, %6, %c0_i32_2 : i32
    scf.if %7 {
      %c0 = arith.constant 0 : index
      %c0_5 = arith.constant 0 : index
      %11 = vector.load %arg2[%c0, %c0_5] : memref<16x128xf32, #tpu.memory_space<vmem>>, vector<16x128xf32>
      %c0_6 = arith.constant 0 : index
      %c0_7 = arith.constant 0 : index
      %12 = vector.load %arg3[%c0_6, %c0_7] : memref<16x128xf32, #tpu.memory_space<vmem>>, vector<16x128xf32>
      %13 = arith.subf %11, %12 : vector<16x128xf32>
      %14 = arith.mulf %13, %13 : vector<16x128xf32>
      %15 = arith.cmpf one, %14, %14 : vector<16x128xf32>
      %cst = arith.constant 0.000000e+00 : f32
      %16 = vector.broadcast %cst : f32 to vector<16x128xf32>
      %17 = arith.select %15, %16, %14 : vector<16x128xi1>, vector<16x128xf32>
      %18 = math.absf %12 : vector<16x128xf32>
      %cst_8 = arith.constant 9.99999997E-7 : f32
      %19 = vector.broadcast %cst_8 : f32 to vector<16x128xf32>
      %20 = arith.cmpf oge, %18, %19 : vector<16x128xf32>
      %21 = math.absf %12 : vector<16x128xf32>
      %cst_9 = arith.constant 1.000000e+00 : f32
      %22 = vector.broadcast %cst_9 : f32 to vector<16x128xf32>
      %23 = arith.select %20, %21, %22 : vector<16x128xi1>, vector<16x128xf32>
      %24 = math.absf %13 : vector<16x128xf32>
      %25 = arith.divf %24, %23 : vector<16x128xf32>
      %cst_10 = arith.constant 0.000000e+00 : f32
      %26 = vector.broadcast %cst_10 : f32 to vector<16x128xf32>
      %27 = arith.select %20, %25, %26 : vector<16x128xi1>, vector<16x128xf32>
      %c0_11 = arith.constant 0 : index
      %c0_12 = arith.constant 0 : index
      %28 = vector.load %arg4[%c0_11, %c0_12] : memref<16x128xf32, #tpu.memory_space<vmem>>, vector<16x128xf32>
      %29 = vector.shape_cast %17 : vector<16x128xf32> to vector<1x16x128xf32>
      %cst_13 = arith.constant dense<0.000000e+00> : vector<16x128xf32>
      %30 = vector.multi_reduction <add>, %29, %cst_13 [0] : vector<1x16x128xf32> to vector<16x128xf32>
      %31 = arith.addf %28, %30 : vector<16x128xf32>
      %c0_14 = arith.constant 0 : index
      %c0_15 = arith.constant 0 : index
      %32 = vector.load %arg4[%c0_14, %c0_15] : memref<16x128xf32, #tpu.memory_space<vmem>>, vector<16x128xf32>
      tpu.vector_store %arg4[%c0_14, %c0_15], %31 {strides = array<i32>} : memref<16x128xf32, #tpu.memory_space<vmem>>, vector<16x128xf32>,
      %c0_16 = arith.constant 0 : index
      %c0_17 = arith.constant 0 : index
      %33 = vector.load %arg5[%c0_16, %c0_17] : memref<16x128xf32, #tpu.memory_space<vmem>>, vector<16x128xf32>
      %34 = vector.shape_cast %27 : vector<16x128xf32> to vector<1x16x128xf32>
      %cst_18 = arith.constant dense<0.000000e+00> : vector<16x128xf32>
      %35 = vector.multi_reduction <add>, %34, %cst_18 [0] : vector<1x16x128xf32> to vector<16x128xf32>
      %36 = arith.addf %33, %35 : vector<16x128xf32>
      %c0_19 = arith.constant 0 : index
      %c0_20 = arith.constant 0 : index
      %37 = vector.load %arg5[%c0_19, %c0_20] : memref<16x128xf32, #tpu.memory_space<vmem>>, vector<16x128xf32>
      tpu.vector_store %arg5[%c0_19, %c0_20], %36 {strides = array<i32>} : memref<16x128xf32, #tpu.memory_space<vmem>>, vector<16x128xf32>,
    } else {
    }
    %c1_i32_3 = arith.constant 1 : i32
    %8 = arith.cmpi sge, %4, %c1_i32_3 : i32
    %9 = arith.extui %8 : i1 to i32
    %c0_i32_4 = arith.constant 0 : i32
    %10 = arith.cmpi ne, %9, %c0_i32_4 : i32
    scf.if %10 {
      %11 = tpu.iota {dimensions = array<i32: 0>} : vector<16x1xi32>
      %c16_i32 = arith.constant 16 : i32
      %12 = arith.muli %4, %c16_i32 : i32
      %13 = vector.broadcast %12 : i32 to vector<16x1xi32>
      %14 = arith.addi %13, %11 : vector<16x1xi32>
      %c16_i32_5 = arith.constant 16 : i32
      %15 = vector.broadcast %c16_i32_5 : i32 to vector<16x1xi32>
      %16 = arith.cmpi slt, %14, %15 : vector<16x1xi32>
      %c0 = arith.constant 0 : index
      %c0_6 = arith.constant 0 : index
      %17 = vector.load %arg2[%c0, %c0_6] : memref<16x128xf32, #tpu.memory_space<vmem>>, vector<16x128xf32>
      %cst = arith.constant 0.000000e+00 : f32
      %18 = vector.shape_cast %16 : vector<16x1xi1> to vector<16x1xi1>
      %19 = vector.broadcast %18 : vector<16x1xi1> to vector<16x128xi1>
      %20 = vector.broadcast %cst : f32 to vector<16x128xf32>
      %21 = arith.select %19, %17, %20 : vector<16x128xi1>, vector<16x128xf32>
      %c0_7 = arith.constant 0 : index
      %c0_8 = arith.constant 0 : index
      %22 = vector.load %arg3[%c0_7, %c0_8] : memref<16x128xf32, #tpu.memory_space<vmem>>, vector<16x128xf32>
      %cst_9 = arith.constant 0.000000e+00 : f32
      %23 = vector.shape_cast %16 : vector<16x1xi1> to vector<16x1xi1>
      %24 = vector.broadcast %23 : vector<16x1xi1> to vector<16x128xi1>
      %25 = vector.broadcast %cst_9 : f32 to vector<16x128xf32>
      %26 = arith.select %24, %22, %25 : vector<16x128xi1>, vector<16x128xf32>
      %27 = arith.subf %21, %26 : vector<16x128xf32>
      %28 = arith.mulf %27, %27 : vector<16x128xf32>
      %29 = arith.cmpf one, %28, %28 : vector<16x128xf32>
      %cst_10 = arith.constant 0.000000e+00 : f32
      %30 = vector.broadcast %cst_10 : f32 to vector<16x128xf32>
      %31 = arith.select %29, %30, %28 : vector<16x128xi1>, vector<16x128xf32>
      %32 = math.absf %26 : vector<16x128xf32>
      %cst_11 = arith.constant 9.99999997E-7 : f32
      %33 = vector.broadcast %cst_11 : f32 to vector<16x128xf32>
      %34 = arith.cmpf oge, %32, %33 : vector<16x128xf32>
      %35 = math.absf %26 : vector<16x128xf32>
      %cst_12 = arith.constant 1.000000e+00 : f32
      %36 = vector.broadcast %cst_12 : f32 to vector<16x128xf32>
      %37 = arith.select %34, %35, %36 : vector<16x128xi1>, vector<16x128xf32>
      %38 = math.absf %27 : vector<16x128xf32>
      %39 = arith.divf %38, %37 : vector<16x128xf32>
      %cst_13 = arith.constant 0.000000e+00 : f32
      %40 = vector.broadcast %cst_13 : f32 to vector<16x128xf32>
      %41 = arith.select %34, %39, %40 : vector<16x128xi1>, vector<16x128xf32>
      %c0_14 = arith.constant 0 : index
      %c0_15 = arith.constant 0 : index
      %42 = vector.load %arg4[%c0_14, %c0_15] : memref<16x128xf32, #tpu.memory_space<vmem>>, vector<16x128xf32>
      %43 = vector.shape_cast %31 : vector<16x128xf32> to vector<1x16x128xf32>
      %cst_16 = arith.constant dense<0.000000e+00> : vector<16x128xf32>
      %44 = vector.multi_reduction <add>, %43, %cst_16 [0] : vector<1x16x128xf32> to vector<16x128xf32>
      %45 = arith.addf %42, %44 : vector<16x128xf32>
      %c0_17 = arith.constant 0 : index
      %c0_18 = arith.constant 0 : index
      %46 = vector.load %arg4[%c0_17, %c0_18] : memref<16x128xf32, #tpu.memory_space<vmem>>, vector<16x128xf32>
      tpu.vector_store %arg4[%c0_17, %c0_18], %45 {strides = array<i32>} : memref<16x128xf32, #tpu.memory_space<vmem>>, vector<16x128xf32>,
      %c0_19 = arith.constant 0 : index
      %c0_20 = arith.constant 0 : index
      %47 = vector.load %arg5[%c0_19, %c0_20] : memref<16x128xf32, #tpu.memory_space<vmem>>, vector<16x128xf32>
      %48 = vector.shape_cast %41 : vector<16x128xf32> to vector<1x16x128xf32>
      %cst_21 = arith.constant dense<0.000000e+00> : vector<16x128xf32>
      %49 = vector.multi_reduction <add>, %48, %cst_21 [0] : vector<1x16x128xf32> to vector<16x128xf32>
      %50 = arith.addf %47, %49 : vector<16x128xf32>
      %c0_22 = arith.constant 0 : index
      %c0_23 = arith.constant 0 : index
      %51 = vector.load %arg5[%c0_22, %c0_23] : memref<16x128xf32, #tpu.memory_space<vmem>>, vector<16x128xf32>
      tpu.vector_store %arg5[%c0_22, %c0_23], %50 {strides = array<i32>} : memref<16x128xf32, #tpu.memory_space<vmem>>, vector<16x128xf32>,
    } else {
    }
    return
  }
  func.func @transform_0(%arg0: i32, %arg1: i32) -> (i32, i32) {
    %c1_i32 = arith.constant 1 : i32
    %0 = arith.muli %arg0, %c1_i32 : i32
    %1 = arith.addi %0, %arg1 : i32
    %c0_i32 = arith.constant 0 : i32
    %2 = arith.minsi %1, %c0_i32 : i32
    %c0_i32_0 = arith.constant 0 : i32
    %c0_i32_1 = arith.constant 0 : i32
    return %2, %c0_i32_0 : i32, i32
  }
  func.func @transform_1(%arg0: i32, %arg1: i32) -> (i32, i32) {
    %c1_i32 = arith.constant 1 : i32
    %0 = arith.muli %arg0, %c1_i32 : i32
    %1 = arith.addi %0, %arg1 : i32
    %c0_i32 = arith.constant 0 : i32
    %2 = arith.minsi %1, %c0_i32 : i32
    %c0_i32_0 = arith.constant 0 : i32
    %c0_i32_1 = arith.constant 0 : i32
    return %2, %c0_i32_0 : i32, i32
  }
  func.func @transform_2(%arg0: i32, %arg1: i32) -> (i32, i32) {
    %c0_i32 = arith.constant 0 : i32
    %c0_i32_0 = arith.constant 0 : i32
    return %arg0, %c0_i32 : i32, i32
  }
  func.func @transform_3(%arg0: i32, %arg1: i32) -> (i32, i32) {
    %c0_i32 = arith.constant 0 : i32
    %c0_i32_0 = arith.constant 0 : i32
    return %arg0, %c0_i32 : i32, i32
  }
}

</mosaic_0001>

<bundles_post_ra>
// kernel: tpu_custom_call.1
= control target key start
LH: loop header
LB: loop body
LE: loop exit
PB: predicated region body
PF: predicated region fallthrough
CT: control target
= control target key end

     0   :  { %9 = vsyncpa [#allocation3], 0  ;;  %s428_s0 = inlined_call_operand.hbm [shape: f32[16,128], index: 0, kind: input, shape index: {}]   ;;  %s429_s1 = inlined_call_operand.hbm [shape: f32[16,128], index: 1, kind: input, shape index: {}]   ;;  %s430_s2 = inlined_call_operand.hbm [shape: f32[16,128], index: 2, kind: output, shape index: {0}]   ;;  %s431_s3 = inlined_call_operand.hbm [shape: f32[16,128], index: 3, kind: output, shape index: {1}]  }
   0x1   :  { %10 = vsyncpa [#allocation6], 0 }
   0x2   :  { %11 = vsyncpa [#allocation4], 0 }
   0x3   :  { %12 = vsyncpa [#allocation9], 0  ;;  %s326_s12 = smov [#allocation2]   ;;  %s230_s16 = scalar_lea.hbm %s428_s0, 256 }
   0x4   :  { %s24_s13 = sshll.u32 %s326_s12, 4  ;;  %p231_p0 = scmp.ne.s32.totalorder %s428_s0, %s230_s16  ;;  %s25_s13 = int_to_ptr.vmem [resolvable:$true] %s24_s13 }
   0x5   :  { %p234_p1 = scmp.lt.u32.totalorder %s230_s16, %s428_s0 }
   0x7   :  { %p236_p2 = pnand %p234_p1, %p231_p0 }
   0x9   :  { %239 = shalt.err (!%p236_p2)
}
   0xa   :  { %s240_s21 = scalar_lea.vmem %s25_s13, 256  ;;  %p245_p4 = scmp.lt.s32.totalorder %s25_s13, %s25_s13 }
   0xb   :  { %p241_p3 = scmp.ne.s32.totalorder %s25_s13, %s240_s21  ;;  %p246_p5 = scmp.lt.s32.totalorder %s240_s21, %s240_s21 }
   0xd   :  { %p247_p6 = por %p246_p5, %p245_p4 }
   0xf   :  { %p248_p7 = pnand %p247_p6, %p241_p3 }
  0x11   :  { %251 = shalt.err (!%p248_p7)
}
  0x12   :  { %s327_s22 = smov 128   ;;  %s328_s23 = smov 8  }
  0x13   :  { %30 = dma.hbm_to_vmem [thread:$0]  %s428_s0, 256, %s25_s13, [#allocation3], %s327_s22, %s327_s22, %s328_s23  }
  0x14   :  { %s329_s26 = smov [#allocation5]   ;;  %s252_s30 = scalar_lea.hbm %s429_s1, 256 }
  0x15   :  { %s42_s27 = sshll.u32 %s329_s26, 4  ;;  %p253_p8 = scmp.ne.s32.totalorder %s429_s1, %s252_s30  ;;  %s43_s27 = int_to_ptr.vmem [resolvable:$true] %s42_s27 }
  0x16   :  { %p256_p9 = scmp.lt.u32.totalorder %s252_s30, %s429_s1 }
  0x18   :  { %p258_p10 = pnand %p256_p9, %p253_p8 }
  0x1a   :  { %261 = shalt.err (!%p258_p10)
}
  0x1b   :  { %s262_s8 = scalar_lea.vmem %s43_s27, 256  ;;  %p267_p12 = scmp.lt.s32.totalorder %s43_s27, %s43_s27 }
  0x1c   :  { %p263_p11 = scmp.ne.s32.totalorder %s43_s27, %s262_s8  ;;  %p268_p13 = scmp.lt.s32.totalorder %s262_s8, %s262_s8 }
  0x1e   :  { %p269_p0 = por %p268_p13, %p267_p12 }
  0x20   :  { %p270_p1 = pnand %p269_p0, %p263_p11 }
  0x22   :  { %273 = shalt.err (!%p270_p1)
}
  0x23   :  { %48 = dma.hbm_to_vmem [thread:$0]  %s429_s1, 256, %s43_s27, [#allocation6], %s327_s22, %s327_s22, %s328_s23  }
  0x24   :  { %318 = dma.done.wait [#allocation3], 256  }
  0x25   :  { %319 = vsyncadd [#allocation3], 4294967040 }
  0x26   :  { %320 = dma.done.wait [#allocation6], 256  }
  0x27   :  { %321 = vsyncadd [#allocation6], 4294967040  ;;  %v76_v0 = vld [vmem:[#allocation2] sm:$0xff]  ;;  %v78_v1 = vld [vmem:[#allocation5] sm:$0xff]  ;;  %s330_s1 = smov [#allocation7]  }
  0x28   :  { %v77_v2 = vld [vmem:[#allocation2 + $0x8] sm:$0xff]  ;;  %v80_v3 = vsub.f32 %v76_v0, %v78_v1  ;;  %v79_v4 = vld [vmem:[#allocation5 + $0x8] sm:$0xff]  ;;  %v88_v5 = vand.u32 2147483647, %v78_v1  ;;  %s186_s10 = sshll.u32 %s330_s1, 4  ;;  %s187_s10 = int_to_ptr.vmem [resolvable:$true] %s186_s10 }
  0x29   :  { %v81_v6 = vsub.f32 %v77_v2, %v79_v4  ;;  %v89_v7 = vand.u32 2147483647, %v79_v4  ;;  %s274_s11 = scalar_lea.vmem %s187_s10, 256  ;;  %p279_p3 = scmp.lt.s32.totalorder %s187_s10, %s187_s10 }
  0x2a   :  { %v82_v8 = vmul.f32 %v80_v3, %v80_v3  ;;  %vm382_vm0 = vcmp.ge.f32.partialorder %v88_v5, 1e-06  ;;  %p275_p2 = scmp.ne.s32.totalorder %s187_s10, %s274_s11  ;;  %p280_p4 = scmp.lt.s32.totalorder %s274_s11, %s274_s11 }
  0x2b   :  { %v83_v10 = vmul.f32 %v81_v6, %v81_v6  ;;  %v92_v11 = vsel %vm382_vm0, %v88_v5, 1.0  ;;  %vm388_vm1 = vcmp.ge.f32.partialorder %v89_v7, 1e-06 }
  0x2c   :  { %vm84_vm2 = vcmp.ne.f32.partialorder %v82_v8, %v82_v8  ;;  %226 = vrcp.f32 %v92_v11  ;;  %v93_v13 = vsel %vm388_vm1, %v89_v7, 1.0  ;;  %p281_p5 = por %p280_p4, %p279_p3 }
  0x2d   :  { %v86_v14 = vsel %vm84_vm2, 0.0, %v82_v8  ;;  %vm85_vm3 = vcmp.ne.f32.partialorder %v83_v10, %v83_v10  ;;  %228 = vrcp.f32 %v93_v13 }
  0x2e   :  { %v87_v15 = vsel %vm85_vm3, 0.0, %v83_v10  ;;  %108 = vst [vmem:[#allocation7] sm:$0xff] %v86_v14  ;;  %p282_p6 = pnand %p281_p5, %p275_p2 }
  0x2f   :  { %109 = vst [vmem:[#allocation7 + $0x8] sm:$0xff] %v87_v15 }
  0x30   :  { %285 = shalt.err (!%p282_p6)
}
  0x31   :  { %s286_s14 = scalar_lea.hbm %s430_s2, 256 }
  0x32   :  { %p287_p7 = scmp.ne.s32.totalorder %s430_s2, %s286_s14  ;;  %p290_p8 = scmp.lt.u32.totalorder %s286_s14, %s430_s2 }
  0x34   :  { %p292_p9 = pnand %p290_p8, %p287_p7 }
  0x36   :  { %295 = shalt.err (!%p292_p9)
}
  0x37   :  { %192 = dma.vmem_to_hbm [thread:$0]  %s187_s10, 256, %s430_s2, [#allocation4], %s327_s22, %s327_s22, %s328_s23   ;;  %v94_v16 = vand.u32 2147483647, %v80_v3  ;;  %v95_v17 = vand.u32 2147483647, %v81_v6  ;;  %v227_v18 = vpop.eup %226 }
  0x38   :  { %v229_v19 = vpop.eup %228  ;;  %s331_s21 = smov [#allocation8]  }
  0x39   :  { %v97_v20 = vmul.f32 %v227_v18, %v94_v16  ;;  %v99_v21 = vmul.f32 %v229_v19, %v95_v17  ;;  %s198_s24 = sshll.u32 %s331_s21, 4  ;;  %s199_s24 = int_to_ptr.vmem [resolvable:$true] %s198_s24 }
  0x3a   :  { %s296_s25 = scalar_lea.vmem %s199_s24, 256  ;;  %p301_p11 = scmp.lt.s32.totalorder %s199_s24, %s199_s24 }
  0x3b   :  { %v100_v22 = vsel %vm382_vm0, %v97_v20, 0.0  ;;  %v101_v23 = vsel %vm388_vm1, %v99_v21, 0.0  ;;  %p297_p10 = scmp.ne.s32.totalorder %s199_s24, %s296_s25  ;;  %p302_p12 = scmp.lt.s32.totalorder %s296_s25, %s296_s25 }
  0x3c   :  { %116 = vst [vmem:[#allocation8] sm:$0xff] %v100_v22  ;;  %117 = vst [vmem:[#allocation8 + $0x8] sm:$0xff] %v101_v23 }
  0x3d   :  { %p303_p13 = por %p302_p12, %p301_p11 }
  0x3f   :  { %p304_p0 = pnand %p303_p13, %p297_p10 }
  0x41   :  { %307 = shalt.err (!%p304_p0)
}
  0x42   :  { %s308_s27 = scalar_lea.hbm %s431_s3, 256 }
  0x43   :  { %p309_p1 = scmp.ne.s32.totalorder %s431_s3, %s308_s27  ;;  %p312_p2 = scmp.lt.u32.totalorder %s308_s27, %s431_s3 }
  0x45   :  { %p314_p3 = pnand %p312_p2, %p309_p1 }
  0x47   :  { %317 = shalt.err (!%p314_p3)
}
  0x48   :  { %204 = dma.vmem_to_hbm [thread:$0]  %s199_s24, 256, %s431_s3, [#allocation9], %s327_s22, %s327_s22, %s328_s23  }
  0x49   :  { %322 = dma.done.wait [#allocation4], 256  }
  0x4a   :  { %323 = vsyncadd [#allocation4], 4294967040 }
  0x4b   :  { %324 = dma.done.wait [#allocation9], 256  }
  0x4c   :  { %325 = vsyncadd [#allocation9], 4294967040 }
  0x4d   :  { %211 = vsyncpa [#allocation3], 1 }
  0x4e   :  { %212 = vsyncpa [#allocation6], 1 }
  0x4f   :  { %213 = vsyncpa [#allocation4], 1 }
  0x50   :  { %214 = vsyncpa [#allocation9], 1 }

</bundles_post_ra>
